<compile_context>
chip_gen: v7x
topology: tpu7x:2x2x1
jax: 0.10.0
libtpu: 0.0.40
codegen_flags: <defaults>
</compile_context>

<pallas_src>
from functools import partial

import jax
import jax.numpy as jnp
from jax.experimental import pallas as pl
from jax.experimental.pallas import tpu as pltpu


_VMEM_LIMIT_BYTES = 48 * 1024 * 1024  # <= 64 MiB physical on v7x, with headroom


# ---------------------------------------------------------------------------
# small helpers
# ---------------------------------------------------------------------------
def _pick_tile(dim, target, aligns, max_fallback=4096):
    """Largest divisor of `dim` that is <= target and a multiple of one of
    `aligns` (tried in preference order).  Falls back to the full dim
    (block == full array dim is always legal) but guards against silently
    huge fallbacks that would blow the VMEM budget (esp. v7x 64 MiB)."""
    if dim <= target:
        return dim
    for align in aligns:
        hi = (min(target, dim) // align) * align
        for cand in range(hi, 0, -align):
            if dim % cand == 0:
                return cand
    if dim > max_fallback:
        raise ValueError(
            f"_pick_tile: no aligned tile <= {target} divides {dim}; "
            f"full-dim fallback ({dim}) exceeds the guard ({max_fallback}). "
            f"Pad the dimension or pass an explicit tile size.")
    return dim


def _pick_q_tile(n, target=128):
    """Query-row tile for attention: divisor of N, multiple of 8, else full N."""
    if n <= target:
        return n
    for cand in range(target, 15, -1):
        if n % cand == 0 and cand % 8 == 0:
            return cand
    return n


def _gelu_tanh(x):
    # tanh-approximate GELU (== jax.nn.gelu(approximate=True)).
    # TODO(synk): PyTorch nn.GELU default is the exact erf form; tanh approx is
    # used for guaranteed Mosaic lowering (max abs deviation ~1e-3).
    return 0.5 * x * (1.0 + jnp.tanh(0.7978845608028654 *
                                     (x + 0.044715 * x * x * x)))


# ---------------------------------------------------------------------------
# Kernel 1: fused LayerNorm + linear
#   y = LN(x; gamma, beta) @ W [+ b] [-> gelu]
#   Full channel dim K in one block => no K grid axis, LN computed in the
#   matmul prologue (f32), matmul runs on bf16 operands.
#   grid = (M//tm, Nout//tn)
# ---------------------------------------------------------------------------
def _ln_linear_kernel(*args, has_bias, activation, eps):
    x_ref, g_ref, b_ref, w_ref = args[:4]
    idx = 4
    bias_ref = None
    if has_bias:
        bias_ref = args[idx]
        idx += 1
    o_ref = args[idx]

    x = x_ref[...].astype(jnp.float32)                       # (tm, K)
    mu = jnp.mean(x, axis=-1, keepdims=True)
    xc = x - mu
    var = jnp.mean(xc * xc, axis=-1, keepdims=True)
    inv = jax.lax.rsqrt(var + eps)
    xn = xc * inv * g_ref[...].astype(jnp.float32) + b_ref[...].astype(jnp.float32)

    acc = jnp.dot(xn.astype(jnp.bfloat16),
                  w_ref[...].astype(jnp.bfloat16),
                  preferred_element_type=jnp.float32)        # (tm, tn) f32
    if has_bias:
        acc = acc + bias_ref[...].astype(jnp.float32)
    if activation == "gelu":
        acc = _gelu_tanh(acc)
    o_ref[...] = acc.astype(o_ref.dtype)


def ln_linear_pallas(x2d, gamma, beta, w, bias=None, activation=None,
                     out_dtype=None, eps=1e-5, tm=512, tn=512):
    """x2d: (M, K) f32, w: (K, Nout) bf16 -> (M, Nout) out_dtype."""
    M, K = x2d.shape
    Nout = w.shape[1]
    tm = _pick_tile(M, tm, aligns=(8,))
    tn = _pick_tile(Nout, tn, aligns=(256, 128))   # 256-aligned for v6e/v7x MXU
    out_dtype = out_dtype or x2d.dtype

    in_specs = [
        pl.BlockSpec((tm, K), lambda i, j: (i, 0)),
        pl.BlockSpec((1, K), lambda i, j: (0, 0)),
        pl.BlockSpec((1, K), lambda i, j: (0, 0)),
        pl.BlockSpec((K, tn), lambda i, j: (0, j)),
    ]
    args = [x2d, gamma.reshape(1, K), beta.reshape(1, K), w]
    if bias is not None:
        in_specs.append(pl.BlockSpec((1, tn), lambda i, j: (0, j)))
        args.append(bias.reshape(1, Nout))

    kernel = partial(_ln_linear_kernel, has_bias=bias is not None,
                     activation=activation, eps=eps)
    return pl.pallas_call(
        kernel,
        out_shape=jax.ShapeDtypeStruct((M, Nout), out_dtype),
        grid=(M // tm, Nout // tn),
        in_specs=in_specs,
        out_specs=pl.BlockSpec((tm, tn), lambda i, j: (i, j)),
        compiler_params=pltpu.CompilerParams(
            dimension_semantics=("parallel", "parallel"),
            vmem_limit_bytes=_VMEM_LIMIT_BYTES),
    )(*args)


# ---------------------------------------------------------------------------
# Kernel 2: tiled linear  y = x @ W [+ b] [+ residual]
#   grid = (M//tm, Nout//tn, K//tk), bf16 MXU operands, f32 VMEM accumulator.
# ---------------------------------------------------------------------------
def _linear_kernel(*args, has_bias, has_residual, activation):
    x_ref, w_ref = args[0], args[1]
    idx = 2
    b_ref = None
    r_ref = None
    if has_bias:
        b_ref = args[idx]
        idx += 1
    if has_residual:
        r_ref = args[idx]
        idx += 1
    o_ref, acc_ref = args[idx], args[idx + 1]

    k = pl.program_id(2)

    @pl.when(k == 0)
    def _():
        acc_ref[...] = jnp.zeros_like(acc_ref)

    acc_ref[...] += jnp.dot(x_ref[...].astype(jnp.bfloat16),
                            w_ref[...].astype(jnp.bfloat16),
                            preferred_element_type=jnp.float32)

    @pl.when(k == pl.num_programs(2) - 1)
    def _():
        acc = acc_ref[...]
        if has_bias:
            acc = acc + b_ref[...].astype(jnp.float32)
        if activation == "gelu":
            acc = _gelu_tanh(acc)
        if has_residual:
            acc = acc + r_ref[...].astype(jnp.float32)
        o_ref[...] = acc.astype(o_ref.dtype)


def linear_pallas(x2d, w, bias=None, residual=None, activation=None,
                  out_dtype=None, tm=512, tn=512, tk=1024):
    """x2d: (M, K), w: (K, Nout) bf16, bias: (Nout,) or None,
    residual: (M, Nout) or None -> (M, Nout)."""
    M, K = x2d.shape
    Nout = w.shape[1]
    tm = _pick_tile(M, tm, aligns=(8,))
    tn = _pick_tile(Nout, tn, aligns=(256, 128))
    tk = _pick_tile(K, tk, aligns=(256, 128))    # K <= 1024 -> single K block
    if out_dtype is None:
        out_dtype = residual.dtype if residual is not None else x2d.dtype

    in_specs = [
        pl.BlockSpec((tm, tk), lambda i, j, k: (i, k)),
        pl.BlockSpec((tk, tn), lambda i, j, k: (k, j)),
    ]
    args = [x2d, w]
    if bias is not None:
        in_specs.append(pl.BlockSpec((1, tn), lambda i, j, k: (0, j)))
        args.append(bias.reshape(1, Nout))
    if residual is not None:
        in_specs.append(pl.BlockSpec((tm, tn), lambda i, j, k: (i, j)))
        args.append(residual)

    kernel = partial(_linear_kernel,
                     has_bias=bias is not None,
                     has_residual=residual is not None,
                     activation=activation)

    return pl.pallas_call(
        kernel,
        out_shape=jax.ShapeDtypeStruct((M, Nout), out_dtype),
        grid=(M // tm, Nout // tn, K // tk),
        in_specs=in_specs,
        out_specs=pl.BlockSpec((tm, tn), lambda i, j, k: (i, j)),
        scratch_shapes=[pltpu.VMEM((tm, tn), jnp.float32)],
        compiler_params=pltpu.CompilerParams(
            dimension_semantics=("parallel", "parallel", "arbitrary"),
            vmem_limit_bytes=_VMEM_LIMIT_BYTES),
    )(*args)


# ---------------------------------------------------------------------------
# Kernel 3: multi-head attention core.
#   grid = (B, N//tq); per-head q/k/v sliced directly off the (N, 3C) qkv Ref,
#   bf16 MXU operands, f32 softmax, per-head writes into the (tq, C) output
#   block (single lane-dense HBM writeback).
# ---------------------------------------------------------------------------
def _attn_kernel(qkv_ref, o_ref, *, num_heads, scale, tq):
    C = o_ref.shape[-1]
    Dh = C // num_heads
    q_start = pl.multiple_of(pl.program_id(1) * tq, tq)

    for h in range(num_heads):                         # static unroll
        # Ref-level slices: stream only what each head needs (no slab load).
        q = qkv_ref[0, pl.ds(q_start, tq), pl.ds(h * Dh, Dh)]          # (tq, Dh)
        k = qkv_ref[0, :, pl.ds(C + h * Dh, Dh)]                       # (N,  Dh)
        v = qkv_ref[0, :, pl.ds(2 * C + h * Dh, Dh)]                   # (N,  Dh)

        # scores: contract last dims of q and k (no explicit transpose).
        # TODO(synk): the QK^T contraction is only Dh (<=64) deep, so the MXU
        # weight side is partially occupied; acceptable for ViT-sized heads.
        s = jax.lax.dot_general(q.astype(jnp.bfloat16), k.astype(jnp.bfloat16),
                                (((1,), (1,)), ((), ())),
                                preferred_element_type=jnp.float32) * scale
        s = s - jnp.max(s, axis=-1, keepdims=True)
        p = jnp.exp(s)
        p = p * pl.reciprocal(jnp.sum(p, axis=-1, keepdims=True), approx=True)
        # attn_drop ratio 0.0 -> identity
        out_h = jnp.dot(p.astype(jnp.bfloat16), v.astype(jnp.bfloat16),
                        preferred_element_type=jnp.float32)            # (tq, Dh)
        # per-head store into the VMEM-resident output block (no concatenate)
        o_ref[0, :, pl.ds(h * Dh, Dh)] = out_h.astype(o_ref.dtype)


def attention_core_pallas(qkv, num_heads, scale, tq=128):
    """qkv: (B, N, 3C) bf16 -> (B, N, C) bf16."""
    B, N, C3 = qkv.shape
    C = C3 // 3
    tq = _pick_q_tile(N, tq)
    return pl.pallas_call(
        partial(_attn_kernel, num_heads=num_heads, scale=scale, tq=tq),
        out_shape=jax.ShapeDtypeStruct((B, N, C), qkv.dtype),
        grid=(B, N // tq),
        in_specs=[pl.BlockSpec((1, N, C3), lambda b, qi: (b, 0, 0))],
        out_specs=pl.BlockSpec((1, tq, C), lambda b, qi: (b, qi, 0)),
        compiler_params=pltpu.CompilerParams(
            dimension_semantics=("parallel", "parallel"),
            vmem_limit_bytes=_VMEM_LIMIT_BYTES),
    )(qkv)
    # TODO(synk): for very long sequences switch to an online-softmax (flash)
    # form blocked over KV so the (tq, N) scores never grow unbounded; for
    # ViT-sized N this dense form is the right regime.


# ---------------------------------------------------------------------------
# Full Block forward:
#   x = x + proj(attn(norm1(x)))          (drop_path / proj_drop = identity)
#   x = x + fc2(gelu(fc1(norm2(x))))      (mlp drop = identity)
# ---------------------------------------------------------------------------
def block_forward(x, params, num_heads):
    B, N, C = x.shape
    head_dim = C // num_heads
    scale = head_dim ** -0.5
    x2d = x.reshape(B * N, C)                       # f32 residual stream

    # ---- attention branch: fused LN1 + qkv (bf16 out), attention, proj+res ----
    qkv = ln_linear_pallas(x2d, params["ln1_g"], params["ln1_b"],
                           params["w_qkv"], bias=None,  # qkv_bias=False
                           out_dtype=jnp.bfloat16)
    attn_o = attention_core_pallas(qkv.reshape(B, N, 3 * C), num_heads, scale)
    x2d = linear_pallas(attn_o.reshape(B * N, C), params["w_proj"],
                        bias=params["b_proj"], residual=x2d)

    # ---- MLP branch: fused LN2 + fc1 + GELU (bf16 out), fc2 + residual ----
    h = ln_linear_pallas(x2d, params["ln2_g"], params["ln2_b"],
                         params["w_fc1"], bias=params["b_fc1"],
                         activation="gelu", out_dtype=jnp.bfloat16)
    x2d = linear_pallas(h, params["w_fc2"], bias=params["b_fc2"], residual=x2d)

    return x2d.reshape(B, N, C)


def init_params(key, dim, mlp_ratio=4.0, param_dtype=jnp.bfloat16):
    """Deterministic synthetic parameters (shapes from the nn.Module __init__).
    Matmul weights stored bf16 (halved HBM traffic); LN params / biases f32."""
    hidden = int(dim * mlp_ratio)
    ks = jax.random.split(key, 6)
    s_in = 1.0 / jnp.sqrt(dim)
    s_h = 1.0 / jnp.sqrt(hidden)
    return {
        # norm1 / norm2: nn.LayerNorm(dim)
        "ln1_g": jnp.ones((dim,), jnp.float32),
        "ln1_b": jnp.zeros((dim,), jnp.float32),
        "ln2_g": jnp.ones((dim,), jnp.float32),
        "ln2_b": jnp.zeros((dim,), jnp.float32),
        # attn.qkv: nn.Linear(dim, 3*dim, bias=False); stored (dim, 3*dim)
        "w_qkv": (jax.random.normal(ks[0], (dim, 3 * dim), jnp.float32)
                  * s_in).astype(param_dtype),
        # attn.proj: nn.Linear(dim, dim)
        "w_proj": (jax.random.normal(ks[1], (dim, dim), jnp.float32)
                   * s_in).astype(param_dtype),
        "b_proj": jax.random.normal(ks[2], (dim,), jnp.float32) * 0.02,
        # mlp.fc1 / mlp.fc2
        "w_fc1": (jax.random.normal(ks[3], (dim, hidden), jnp.float32)
                  * s_in).astype(param_dtype),
        "b_fc1": jax.random.normal(ks[4], (hidden,), jnp.float32) * 0.02,
        "w_fc2": (jax.random.normal(ks[5], (hidden, dim), jnp.float32)
                  * s_h).astype(param_dtype),
        "b_fc2": jnp.zeros((dim,), jnp.float32),
    }


# ---------------------------------------------------------------------------
# Pure-JAX reference (f32) for correctness sanity-check.
# ---------------------------------------------------------------------------
def block_forward_ref(x, params, num_heads):
    f32 = lambda a: a.astype(jnp.float32)

    def ln(h, g, b, eps=1e-5):
        mu = h.mean(-1, keepdims=True)
        var = ((h - mu) ** 2).mean(-1, keepdims=True)
        return (h - mu) * jax.lax.rsqrt(var + eps) * g + b

    B, N, C = x.shape
    Dh = C // num_heads
    scale = Dh ** -0.5

    h = ln(x, f32(params["ln1_g"]), f32(params["ln1_b"]))
    qkv = h @ f32(params["w_qkv"])
    qkv = qkv.reshape(B, N, 3, num_heads, Dh).transpose(2, 0, 3, 1, 4)
    q, k, v = qkv[0], qkv[1], qkv[2]
    attn = jax.nn.softmax((q @ jnp.swapaxes(k, -1, -2)) * scale, axis=-1)
    o = (attn @ v).transpose(0, 2, 1, 3).reshape(B, N, C)
    x = x + o @ f32(params["w_proj"]) + f32(params["b_proj"])

    h = ln(x, f32(params["ln2_g"]), f32(params["ln2_b"]))
    h = jax.nn.gelu(h @ f32(params["w_fc1"]) + f32(params["b_fc1"]),
                    approximate=True)
    x = x + h @ f32(params["w_fc2"]) + f32(params["b_fc2"])
    return x


if __name__ == "__main__":
    B, N, C = 2, 8, 32
    num_heads = 8  # head_dim = 4

    key = jax.random.PRNGKey(0)
    kx, kp = jax.random.split(key)
    x = jax.random.normal(kx, (B, N, C), jnp.float32)
    params = init_params(kp, C)

    out = jax.block_until_ready(block_forward(x, params, num_heads))
    assert out.shape == (B, N, C), out.shape
    assert bool(jnp.all(jnp.isfinite(out)))

    ref = block_forward_ref(x, params, num_heads)
    max_err = float(jnp.max(jnp.abs(out - ref)))
    # generous tolerance: bf16 MXU operands + approx reciprocal in softmax
    assert max_err < 0.15, f"max abs err vs f32 reference: {max_err}"

    print("KERNEL_OK")
</pallas_src>

<mosaic_0001>
module attributes {stable_mosaic.version = 11 : i64} {
  func.func @_ln_linear_kernel(%arg0: i32, %arg1: i32, %arg2: memref<16x32xf32, #tpu.memory_space<vmem>>, %arg3: memref<1x32xf32, #tpu.memory_space<vmem>>, %arg4: memref<1x32xf32, #tpu.memory_space<vmem>>, %arg5: memref<32x96xbf16, #tpu.memory_space<vmem>>, %arg6: memref<16x96xbf16, #tpu.memory_space<vmem>>) attributes {dimension_semantics = [#tpu.dimension_semantics<parallel>, #tpu.dimension_semantics<parallel>], iteration_bounds = array<i64: 1, 1>, scalar_prefetch = 0 : i64, scratch_operands = 0 : i64, tpu.core_type = #tpu.core_type<tc>, window_params = [{transform_indices = @transform_0, window_bounds = array<i64: 16, 32>}, {pipeline_mode = #tpu.pipeline_mode<synchronous>, transform_indices = @transform_1, window_bounds = array<i64: 1, 32>}, {pipeline_mode = #tpu.pipeline_mode<synchronous>, transform_indices = @transform_2, window_bounds = array<i64: 1, 32>}, {transform_indices = @transform_3, window_bounds = array<i64: 32, 96>}, {transform_indices = @transform_4, window_bounds = array<i64: 16, 96>}]} {
    %c0 = arith.constant 0 : index
    %c0_0 = arith.constant 0 : index
    %0 = vector.load %arg2[%c0, %c0_0] : memref<16x32xf32, #tpu.memory_space<vmem>>, vector<16x32xf32>
    %cst = arith.constant dense<0.000000e+00> : vector<16xf32>
    %1 = vector.multi_reduction <add>, %0, %cst [1] : vector<16x32xf32> to vector<16xf32>
    %2 = vector.shape_cast %1 : vector<16xf32> to vector<16x1xf32>
    %cst_1 = arith.constant 3.200000e+01 : f32
    %3 = vector.broadcast %cst_1 : f32 to vector<16x1xf32>
    %4 = arith.divf %2, %3 : vector<16x1xf32>
    %5 = vector.broadcast %4 : vector<16x1xf32> to vector<16x32xf32>
    %6 = arith.subf %0, %5 : vector<16x32xf32>
    %7 = arith.mulf %6, %6 : vector<16x32xf32>
    %cst_2 = arith.constant dense<0.000000e+00> : vector<16xf32>
    %8 = vector.multi_reduction <add>, %7, %cst_2 [1] : vector<16x32xf32> to vector<16xf32>
    %9 = vector.shape_cast %8 : vector<16xf32> to vector<16x1xf32>
    %cst_3 = arith.constant 3.200000e+01 : f32
    %10 = vector.broadcast %cst_3 : f32 to vector<16x1xf32>
    %11 = arith.divf %9, %10 : vector<16x1xf32>
    %cst_4 = arith.constant 9.99999974E-6 : f32
    %12 = vector.broadcast %cst_4 : f32 to vector<16x1xf32>
    %13 = arith.addf %11, %12 : vector<16x1xf32>
    %14 = math.rsqrt %13 : vector<16x1xf32>
    %15 = vector.broadcast %14 : vector<16x1xf32> to vector<16x32xf32>
    %16 = arith.mulf %6, %15 : vector<16x32xf32>
    %c0_5 = arith.constant 0 : index
    %c0_6 = arith.constant 0 : index
    %17 = vector.load %arg3[%c0_5, %c0_6] : memref<1x32xf32, #tpu.memory_space<vmem>>, vector<1x32xf32>
    %18 = vector.broadcast %17 : vector<1x32xf32> to vector<16x32xf32>
    %19 = arith.mulf %16, %18 : vector<16x32xf32>
    %c0_7 = arith.constant 0 : index
    %c0_8 = arith.constant 0 : index
    %20 = vector.load %arg4[%c0_7, %c0_8] : memref<1x32xf32, #tpu.memory_space<vmem>>, vector<1x32xf32>
    %21 = vector.broadcast %20 : vector<1x32xf32> to vector<16x32xf32>
    %22 = arith.addf %19, %21 : vector<16x32xf32>
    %23 = arith.truncf %22 : vector<16x32xf32> to vector<16x32xbf16>
    %c0_9 = arith.constant 0 : index
    %c0_10 = arith.constant 0 : index
    %24 = vector.load %arg5[%c0_9, %c0_10] : memref<32x96xbf16, #tpu.memory_space<vmem>>, vector<32x96xbf16>
    %cst_11 = arith.constant dense<0.000000e+00> : vector<16x96xf32>
    %25 = tpu.matmul %23, %24, %cst_11 {dimension_numbers = #tpu.dot_dimension_numbers<[1], [0], [0], [1], [0, 0, 1, 1], [], []>} : vector<16x32xbf16>, vector<32x96xbf16>, vector<16x96xf32> -> vector<16x96xf32>
    %26 = arith.truncf %25 : vector<16x96xf32> to vector<16x96xbf16>
    %c0_12 = arith.constant 0 : index
    %c0_13 = arith.constant 0 : index
    %27 = vector.load %arg6[%c0_12, %c0_13] : memref<16x96xbf16, #tpu.memory_space<vmem>>, vector<16x96xbf16>
    tpu.vector_store %arg6[%c0_12, %c0_13], %26 {strides = array<i32>} : memref<16x96xbf16, #tpu.memory_space<vmem>>, vector<16x96xbf16>,
    return
  }
  func.func @transform_0(%arg0: i32, %arg1: i32) -> (i32, i32) {
    %c0_i32 = arith.constant 0 : i32
    %c0_i32_0 = arith.constant 0 : i32
    return %arg0, %c0_i32 : i32, i32
  }
  func.func @transform_1(%arg0: i32, %arg1: i32) -> (i32, i32) {
    %c0_i32 = arith.constant 0 : i32
    %c0_i32_0 = arith.constant 0 : i32
    %c0_i32_1 = arith.constant 0 : i32
    return %c0_i32, %c0_i32_0 : i32, i32
  }
  func.func @transform_2(%arg0: i32, %arg1: i32) -> (i32, i32) {
    %c0_i32 = arith.constant 0 : i32
    %c0_i32_0 = arith.constant 0 : i32
    %c0_i32_1 = arith.constant 0 : i32
    return %c0_i32, %c0_i32_0 : i32, i32
  }
  func.func @transform_3(%arg0: i32, %arg1: i32) -> (i32, i32) {
    %c0_i32 = arith.constant 0 : i32
    %c0_i32_0 = arith.constant 0 : i32
    return %c0_i32, %arg1 : i32, i32
  }
  func.func @transform_4(%arg0: i32, %arg1: i32) -> (i32, i32) {
    %c0_i32 = arith.constant 0 : i32
    return %arg0, %arg1 : i32, i32
  }
}

</mosaic_0001>

<bundles_post_ra>
// kernel: tpu_custom_call.1
= control target key start
LH: loop header
LB: loop body
LE: loop exit
PB: predicated region body
PF: predicated region fallthrough
CT: control target
= control target key end

     0   :  { %9 = vsyncpa [#allocation3], 0  ;;  %s379_s0 = inlined_call_operand.hbm [shape: f32[16,32], index: 0, kind: input, shape index: {}]   ;;  %s380_s1 = inlined_call_operand.vmem [shape: f32[1,32], index: 1, kind: input, shape index: {}]   ;;  %s381_s2 = inlined_call_operand.vmem [shape: f32[1,32], index: 2, kind: input, shape index: {}]   ;;  %s382_s3 = inlined_call_operand.hbm [shape: bf16[32,96], index: 3, kind: input, shape index: {}]   ;;  %s383_s4 = inlined_call_operand.hbm [shape: bf16[16,96], index: 4, kind: output, shape index: {}]  }
   0x1   :  { %10 = vsyncpa [#allocation6], 0 }
   0x2   :  { %11 = vsyncpa [#allocation4], 0  ;;  %s292_s15 = smov [#allocation2]   ;;  %s220_s19 = scalar_lea.hbm %s379_s0, 256 }
   0x3   :  { %s17_s16 = sshll.u32 %s292_s15, 4  ;;  %p221_p0 = scmp.ne.s32.totalorder %s379_s0, %s220_s19  ;;  %s18_s16 = int_to_ptr.vmem [resolvable:$true] %s17_s16 }
   0x4   :  { %p224_p1 = scmp.lt.u32.totalorder %s220_s19, %s379_s0 }
   0x6   :  { %p226_p2 = pnand %p224_p1, %p221_p0 }
   0x8   :  { %229 = shalt.err (!%p226_p2)
}
   0x9   :  { %s230_s24 = scalar_lea.vmem %s18_s16, 256  ;;  %p235_p4 = scmp.lt.s32.totalorder %s18_s16, %s18_s16 }
   0xa   :  { %p231_p3 = scmp.ne.s32.totalorder %s18_s16, %s230_s24  ;;  %p236_p5 = scmp.lt.s32.totalorder %s230_s24, %s230_s24 }
   0xc   :  { %p237_p6 = por %p236_p5, %p235_p4 }
   0xe   :  { %p238_p7 = pnand %p237_p6, %p231_p3 }
  0x10   :  { %241 = shalt.err (!%p238_p7)
}
  0x11   :  { %s293_s25 = smov 128   ;;  %s294_s26 = smov 8  }
  0x12   :  { %23 = dma.hbm_to_vmem [thread:$0]  %s379_s0, 256, %s18_s16, [#allocation3], %s293_s25, %s293_s25, %s294_s26  }
  0x13   :  { %s295_s29 = smov [#allocation5]   ;;  %s242_s7 = scalar_lea.hbm %s382_s3, 256 }
  0x14   :  { %s33_s30 = sshll.u32 %s295_s29, 4  ;;  %p243_p8 = scmp.ne.s32.totalorder %s382_s3, %s242_s7  ;;  %s34_s30 = int_to_ptr.vmem [resolvable:$true] %s33_s30 }
  0x15   :  { %p246_p9 = scmp.lt.u32.totalorder %s242_s7, %s382_s3 }
  0x17   :  { %p248_p10 = pnand %p246_p9, %p243_p8 }
  0x19   :  { %251 = shalt.err (!%p248_p10)
}
  0x1a   :  { %s252_s12 = scalar_lea.vmem %s34_s30, 256  ;;  %p257_p12 = scmp.lt.s32.totalorder %s34_s30, %s34_s30 }
  0x1b   :  { %p253_p11 = scmp.ne.s32.totalorder %s34_s30, %s252_s12  ;;  %p258_p13 = scmp.lt.s32.totalorder %s252_s12, %s252_s12 }
  0x1d   :  { %p259_p0 = por %p258_p13, %p257_p12 }
  0x1f   :  { %p260_p1 = pnand %p259_p0, %p253_p11 }
  0x21   :  { %263 = shalt.err (!%p260_p1)
}
  0x22   :  { %s296_s0 = smov 64   ;;  %s297_s13 = smov 4  }
  0x23   :  { %39 = dma.hbm_to_vmem [thread:$0]  %s382_s3, 256, %s34_s30, [#allocation6], %s296_s0, %s296_s0, %s297_s13  }
  0x24   :  { %286 = dma.done.wait [#allocation3], 256  }
  0x25   :  { %287 = vsyncadd [#allocation3], 4294967040 }
  0x26   :  { %288 = dma.done.wait [#allocation6], 256  }
  0x27   :  { %289 = vsyncadd [#allocation6], 4294967040  ;;  %vm49_vm0 = vcmask 261120   ;;  %v47_v0 = vld [vmem:[#allocation2] sm:$0xff]  ;;  %v48_v1 = vld [vmem:[#allocation2 + $0x8] sm:$0xff]  ;;  %v298_v15 = vmov 0.0  }
  0x28   :  { %v50_v2 = vsel %vm49_vm0, %v47_v0, 0.0  ;;  %v53_v3 = vsel %vm49_vm0, %v48_v1, 0.0  ;;  %v214_v14 = vld [vmem:[#allocation5] sm:$0xff]   ;;  %197 = vmatprep.subr.bf16.mxu0 %v298_v15  ;;  %v215_v16 = vld [vmem:[#allocation5 + $0x8] sm:$0xff]   ;;  %vm299_vm1 = vmmov 0   ;;  %vm164_vm2 = vcmask 781312  }
  0x29   :  { %51 = vadd.xlane.f32.xlu0 %v50_v2  ;;  %198 = vmatpush3.bf16.msra.mxu0 %v214_v14  ;;  %v185_v25 = vld [vmem:[%s380_s1] ss:$0 sm:$0xff]  ;;  %s300_s19 = smov [#allocation7]  }
  0x2a   :  { %201 = vmatprep.mubr.msk.bf16.mxu0 %vm299_vm1, %v298_v15  ;;  %199 = vmatprep.subr.bf16.mxu0 %v298_v15  ;;  %v186_v29 = vld [vmem:[%s381_s2] ss:$0 sm:$0xff]  ;;  %s172_s20 = sshll.u32 %s300_s19, 4  ;;  %s173_s20 = int_to_ptr.vmem [resolvable:$true] %s172_s20 }
  0x2b   :  { %s264_s1 = scalar_lea.vmem %s173_s20, 128  ;;  %p269_p3 = scmp.lt.s32.totalorder %s173_s20, %s173_s20 }
  0x2c   :  { %p265_p2 = scmp.ne.s32.totalorder %s173_s20, %s264_s1  ;;  %p270_p4 = scmp.lt.s32.totalorder %s264_s1, %s264_s1 }
  0x2d   :  { %54 = vadd.xlane.f32.xlu0 %v53_v3  ;;  %200 = vmatpush3.bf16.msra.mxu0 %v215_v16 }
  0x2e   :  { %p271_p5 = por %p270_p4, %p269_p3 }
  0x30   :  { %p272_p6 = pnand %p271_p5, %p265_p2 }
  0xb6   :  { %v52_v4 = vpop.xlane.xlu0 %51 }
  0xb7   :  { %v57_v5 = vmul.f32 0.03125, %v52_v4 }
  0xb9   :  { %v59_v6 = vsub.f32 %v47_v0, %v57_v5 }
  0xba   :  { %v55_v7 = vpop.xlane.xlu0 %54 }
  0xbb   :  { %v58_v8 = vmul.f32 0.03125, %v55_v7  ;;  %v61_v9 = vmul.f32 %v59_v6, %v59_v6 }
  0xbd   :  { %v60_v10 = vsub.f32 %v48_v1, %v58_v8  ;;  %v63_v11 = vsel %vm49_vm0, %v61_v9, 0.0 }
  0xbe   :  { %64 = vadd.xlane.f32.xlu1 %v63_v11 }
  0xbf   :  { %v62_v12 = vmul.f32 %v60_v10, %v60_v10 }
  0xc1   :  { %v66_v13 = vsel %vm49_vm0, %v62_v12, 0.0 }
  0xc2   :  { %67 = vadd.xlane.f32.xlu1 %v66_v13 }
 0x14b   :  { %v65_v17 = vpop.xlane.xlu1 %64 }
 0x14c   :  { %v69_v18 = vmul.f32 0.03125, %v65_v17 }
 0x14e   :  { %v71_v19 = vadd.f32 1e-05, %v69_v18 }
 0x14f   :  { %v68_v20 = vpop.xlane.xlu1 %67 }
 0x150   :  { %216 = vrsqrt.f32 %v71_v19  ;;  %v70_v21 = vmul.f32 0.03125, %v68_v20 }
 0x152   :  { %v72_v22 = vadd.f32 1e-05, %v70_v21 }
 0x154   :  { %218 = vrsqrt.f32 %v72_v22 }
 0x15a   :  { %v217_v23 = vpop.eup %216 }
 0x15b   :  { %v75_v24 = vmul.f32 %v217_v23, %v59_v6 }
 0x15d   :  { %v84_v28 = vmul.f32 %v185_v25, %v75_v24 }
 0x15e   :  { %v219_v26 = vpop.eup %218 }
 0x15f   :  { %v76_v27 = vmul.f32 %v219_v26, %v60_v10  ;;  %v93_v31 = vadd.f32 %v186_v29, %v84_v28 }
 0x161   :  { %v85_v30 = vmul.f32 %v185_v25, %v76_v27 }
 0x163   :  { %v94_v32 = vadd.f32 %v186_v29, %v85_v30 }
 0x165   :  { %v95_v33 = vpack.c.bf16 %v94_v32, %v93_v31 }
 0x167   :  { %202 = vmatmul.mubr.msk.bf16.vlgmr.msra.gmra.mrb[0].mxu0 %vm49_vm0, %v95_v33 }
 0x23a   :  { %v149_v34 = vpop.f32.mrb[0].mxu0 }
 0x23b   :  { %v192_v35 = vpack.c.bf16 %v149_v34, %v149_v34  ;;  %v203_v36 = vpop.f32.mrb[1].mxu0 }
 0x23c   :  { %v152_v37 = vpop.f32.mrb[2].mxu0 }
 0x23d   :  { %v193_v38 = vpack.c.bf16 %v152_v37, %v152_v37  ;;  %v204_v39 = vpop.f32.mrb[3].mxu0  ;;  %165 = vst.msk [vmem:[#allocation7] sm:$0xf] %vm164_vm2, %v192_v35 }
 0x23f   :  { %166 = vst.msk [vmem:[#allocation7 + $0x4] sm:$0xf] %vm164_vm2, %v193_v38 }
 0x240   :  { %275 = shalt.err (!%p272_p6)
}
 0x241   :  { %s276_s22 = scalar_lea.hbm %s383_s4, 128 }
 0x242   :  { %p277_p7 = scmp.ne.s32.totalorder %s383_s4, %s276_s22  ;;  %p280_p8 = scmp.lt.u32.totalorder %s276_s22, %s383_s4 }
 0x244   :  { %p282_p9 = pnand %p280_p8, %p277_p7 }
 0x246   :  { %285 = shalt.err (!%p282_p9)
}
 0x247   :  { %178 = dma.vmem_to_hbm [thread:$0]  %s173_s20, 128, %s383_s4, [#allocation4], %s296_s0, %s296_s0, %s297_s13  }
 0x248   :  { %290 = dma.done.wait [#allocation4], 128  }
 0x249   :  { %291 = vsyncadd [#allocation4], 4294967168 }
 0x24a   :  { %182 = vsyncpa [#allocation3], 1 }
 0x24b   :  { %183 = vsyncpa [#allocation6], 1 }
 0x24c   :  { %184 = vsyncpa [#allocation4], 1 }

</bundles_post_ra>
